<compile_context>
chip_gen: v7x
topology: tpu7x:2x2x1
jax: 0.10.0
libtpu: 0.0.40
codegen_flags: <defaults>
</compile_context>

<pallas_src>
import jax
import jax.numpy as jnp
from jax import lax
from jax.experimental import pallas as pl
from jax.experimental.pallas import tpu as pltpu

HIDDEN1 = 120
HIDDEN2 = 84
LANE = 128            # vreg lane width / MXU alignment
SUBLANE = 8


def _round_up(n, m):
    return (n + m - 1) // m * m


# ---------------------------------------------------------------------------
# Kernel: all three matmuls + bias + ReLU fused; one batch tile per grid step.
# Operands are bf16, accumulation and epilogue (bias/ReLU) are f32.
# ---------------------------------------------------------------------------
def qnetwork_kernel(x_ref, w1_ref, b1_ref, w2_ref, b2_ref, w3t_ref, b3t_ref, o_ref):
    x = x_ref[...]                                     # (tile_b, obs_dim) bf16

    # Layer 1: Linear(obs_dim -> 128-padded 120) + ReLU (f32 accumulate/epilogue)
    h1 = jnp.dot(x, w1_ref[...], preferred_element_type=jnp.float32) + b1_ref[...]
    h1 = jnp.maximum(h1, 0.0).astype(x.dtype)

    # Layer 2: Linear(128 -> 128-padded 84) + ReLU
    h2 = jnp.dot(h1, w2_ref[...], preferred_element_type=jnp.float32) + b2_ref[...]
    h2 = jnp.maximum(h2, 0.0).astype(x.dtype)

    # Layer 3 (transposed): w3_t (nA_pad8, 128) contracted with h2 (tile_b, 128)
    # over K=128 -> (nA_pad8, tile_b).  Output block is lane-dense on the batch
    # axis, so writeback is unmasked vst and only 8 sublanes wide.
    q_t = lax.dot_general(
        w3t_ref[...], h2,
        dimension_numbers=(((1,), (1,)), ((), ())),
        preferred_element_type=jnp.float32,
    ) + b3t_ref[...]                                   # b3_t is (nA_pad8, 1) f32

    o_ref[...] = q_t.astype(o_ref.dtype)


# ---------------------------------------------------------------------------
# Wrapper
# ---------------------------------------------------------------------------
def qnetwork_forward(x, padded_params, n_actions, *, tile_b=512):
    """x: (batch, obs_dim) f32.  padded_params: lane-padded bf16 weights + f32 biases.

    Returns (batch, n_actions) f32 Q-values.
    """
    w1, b1 = padded_params["w1"], padded_params["b1"]
    w2, b2 = padded_params["w2"], padded_params["b2"]
    w3t, b3t = padded_params["w3t"], padded_params["b3t"]

    batch, obs_dim = x.shape
    na_pad = w3t.shape[0]

    # bf16 operands (f32 accumulation happens inside the kernel).
    x = x.astype(w1.dtype)

    # Sublane-align the batch only (waste stays < one tile even for huge tile_b).
    padded_batch = _round_up(batch, SUBLANE)
    if padded_batch != batch:
        x = jnp.pad(x, ((0, padded_batch - batch), (0, 0)))

    if padded_batch <= tile_b:
        if padded_batch >= 2 * LANE:
            # Batch fits in one tile: force 2 even "parallel" steps so v7x's
            # second TensorCore is used (grid=(1,) would idle it).
            tile_b = _round_up(pl.cdiv(padded_batch, 2), LANE)
        else:
            tile_b = padded_batch            # tiny batch: single full-extent tile
    else:
        tile_b = _round_up(tile_b, LANE)     # multi-tile: keep lane/sublane aligned

    grid = (pl.cdiv(padded_batch, tile_b),)  # last tile may be partial (clipped)

    out = pl.pallas_call(
        qnetwork_kernel,
        out_shape=jax.ShapeDtypeStruct((na_pad, padded_batch), jnp.float32),
        grid=grid,
        in_specs=[
            # activation tile: streams over batch, double-buffered by Pallas
            pl.BlockSpec((tile_b, obs_dim), lambda i: (i, 0)),
            # weights / biases: constant block index -> stay VMEM-resident
            pl.BlockSpec(w1.shape, lambda i: (0, 0)),
            pl.BlockSpec(b1.shape, lambda i: (0, 0)),
            pl.BlockSpec(w2.shape, lambda i: (0, 0)),
            pl.BlockSpec(b2.shape, lambda i: (0, 0)),
            pl.BlockSpec(w3t.shape, lambda i: (0, 0)),
            pl.BlockSpec(b3t.shape, lambda i: (0, 0)),
        ],
        # transposed output: (actions_pad8, batch) — 16x less writeback than a
        # 128-lane-padded action axis.
        out_specs=pl.BlockSpec((na_pad, tile_b), lambda i: (0, i)),
        compiler_params=pltpu.CompilerParams(
            dimension_semantics=("parallel",),  # lets v7x shard batch over 2 TCs
        ),
    )(x, w1, b1, w2, b2, w3t, b3t)

    # (na_pad, padded_batch) -> (batch, n_actions)
    return out[:n_actions, :batch].T


# ---------------------------------------------------------------------------
# Params: init exactly like nn.Linear (uniform +-1/sqrt(fan_in)), stored as
# (in_features, out_features) so the math is y = x @ W + b, then padded/packed
# into the kernel layout.
# ---------------------------------------------------------------------------
def init_params(key, obs_dim, n_actions):
    dims = [(obs_dim, HIDDEN1), (HIDDEN1, HIDDEN2), (HIDDEN2, n_actions)]
    params = {}
    for i, (fan_in, fan_out) in enumerate(dims, start=1):
        key, kw, kb = jax.random.split(key, 3)
        bound = 1.0 / jnp.sqrt(float(fan_in))
        params[f"w{i}"] = jax.random.uniform(
            kw, (fan_in, fan_out), jnp.float32, minval=-bound, maxval=bound
        )
        params[f"b{i}"] = jax.random.uniform(
            kb, (1, fan_out), jnp.float32, minval=-bound, maxval=bound
        )
    return params


def pad_params(params, dtype=jnp.bfloat16):
    """Kernel layout:
      w1 (obs, 128) dtype, b1 (1, 128) f32
      w2 (128, 128) dtype, b2 (1, 128) f32
      w3t (nA_pad8, 128) dtype (= w3.T zero-padded), b3t (nA_pad8, 1) f32
    All padding is zero, so padded hidden activations are exactly 0 after ReLU
    and padded action rows are sliced away in the wrapper — the math matches
    the unpadded network (up to bf16 operand rounding)."""
    def pad2(a, rows, cols):
        r, c = a.shape
        return jnp.pad(a, ((0, rows - r), (0, cols - c)))

    obs_dim = params["w1"].shape[0]
    n_actions = params["w3"].shape[1]
    h1p = _round_up(HIDDEN1, LANE)        # 128
    h2p = _round_up(HIDDEN2, LANE)        # 128
    nap = _round_up(n_actions, SUBLANE)   # 8

    return {
        "w1": pad2(params["w1"], obs_dim, h1p).astype(dtype),
        "b1": pad2(params["b1"], 1, h1p),                       # f32 epilogue
        "w2": pad2(params["w2"], h1p, h2p).astype(dtype),
        "b2": pad2(params["b2"], 1, h2p),
        "w3t": pad2(params["w3"].T, nap, h2p).astype(dtype),
        "b3t": pad2(params["b3"].T, nap, 1),
    }


def reference_forward(x, params):
    """Pure-JAX f32 reference on the UNpadded params (the original module)."""
    h = jnp.maximum(x @ params["w1"] + params["b1"], 0.0)
    h = jnp.maximum(h @ params["w2"] + params["b2"], 0.0)
    return h @ params["w3"] + params["b3"]


def reference_forward_mixed(x, params, dtype=jnp.bfloat16):
    """Mirrors the kernel numerics exactly: dtype operands, f32 accumulate/epilogue."""
    xd = x.astype(dtype)
    h = jnp.maximum(
        jnp.dot(xd, params["w1"].astype(dtype), preferred_element_type=jnp.float32)
        + params["b1"], 0.0).astype(dtype)
    h = jnp.maximum(
        jnp.dot(h, params["w2"].astype(dtype), preferred_element_type=jnp.float32)
        + params["b2"], 0.0).astype(dtype)
    return (jnp.dot(h, params["w3"].astype(dtype), preferred_element_type=jnp.float32)
            + params["b3"])


if __name__ == "__main__":
    # Small synthetic env: obs_dim=8 flat observation, 4 actions.
    batch, obs_dim, n_actions = 2, 8, 4

    key = jax.random.PRNGKey(0)
    key, kx = jax.random.split(key)
    x = jax.random.normal(kx, (batch, obs_dim), dtype=jnp.float32)

    params = init_params(key, obs_dim, n_actions)
    padded_params = pad_params(params)

    q = qnetwork_forward(x, padded_params, n_actions)
    q = jax.block_until_ready(q)
    assert q.shape == (batch, n_actions)

    # Tight check against a reference that mirrors the kernel's bf16/f32 numerics.
    q_mixed = reference_forward_mixed(x, params)
    assert jnp.allclose(q, q_mixed, atol=2e-3, rtol=2e-3), "mismatch vs mixed-precision reference"

    # Loose sanity check against the pure-f32 original module (bf16 operand rounding).
    q_f32 = reference_forward(x, params)
    assert jnp.allclose(q, q_f32, atol=5e-2, rtol=5e-2), "mismatch vs f32 reference"

    print("KERNEL_OK")
</pallas_src>

<mosaic_0001>
module attributes {stable_mosaic.version = 11 : i64} {
  func.func @qnetwork_kernel(%arg0: i32, %arg1: memref<8x8xbf16, #tpu.memory_space<vmem>>, %arg2: memref<8x128xbf16, #tpu.memory_space<vmem>>, %arg3: memref<1x128xf32, #tpu.memory_space<vmem>>, %arg4: memref<128x128xbf16, #tpu.memory_space<vmem>>, %arg5: memref<1x128xf32, #tpu.memory_space<vmem>>, %arg6: memref<8x128xbf16, #tpu.memory_space<vmem>>, %arg7: memref<8x1xf32, #tpu.memory_space<vmem>>, %arg8: memref<8x8xf32, #tpu.memory_space<vmem>>) attributes {dimension_semantics = [#tpu.dimension_semantics<parallel>], iteration_bounds = array<i64: 1>, scalar_prefetch = 0 : i64, scratch_operands = 0 : i64, tpu.core_type = #tpu.core_type<tc>, window_params = [{transform_indices = @transform_0, window_bounds = array<i64: 8, 8>}, {pipeline_mode = #tpu.pipeline_mode<synchronous>, transform_indices = @transform_1, window_bounds = array<i64: 8, 128>}, {pipeline_mode = #tpu.pipeline_mode<synchronous>, transform_indices = @transform_2, window_bounds = array<i64: 1, 128>}, {pipeline_mode = #tpu.pipeline_mode<synchronous>, transform_indices = @transform_3, window_bounds = array<i64: 128, 128>}, {pipeline_mode = #tpu.pipeline_mode<synchronous>, transform_indices = @transform_4, window_bounds = array<i64: 1, 128>}, {pipeline_mode = #tpu.pipeline_mode<synchronous>, transform_indices = @transform_5, window_bounds = array<i64: 8, 128>}, {pipeline_mode = #tpu.pipeline_mode<synchronous>, transform_indices = @transform_6, window_bounds = array<i64: 8, 1>}, {transform_indices = @transform_7, window_bounds = array<i64: 8, 8>}]} {
    %c0 = arith.constant 0 : index
    %c0_0 = arith.constant 0 : index
    %0 = vector.load %arg1[%c0, %c0_0] : memref<8x8xbf16, #tpu.memory_space<vmem>>, vector<8x8xbf16>
    %c0_1 = arith.constant 0 : index
    %c0_2 = arith.constant 0 : index
    %1 = vector.load %arg2[%c0_1, %c0_2] : memref<8x128xbf16, #tpu.memory_space<vmem>>, vector<8x128xbf16>
    %cst = arith.constant dense<0.000000e+00> : vector<8x128xf32>
    %2 = tpu.matmul %0, %1, %cst {dimension_numbers = #tpu.dot_dimension_numbers<[1], [0], [0], [1], [0, 0, 1, 1], [], []>} : vector<8x8xbf16>, vector<8x128xbf16>, vector<8x128xf32> -> vector<8x128xf32>
    %c0_3 = arith.constant 0 : index
    %c0_4 = arith.constant 0 : index
    %3 = vector.load %arg3[%c0_3, %c0_4] : memref<1x128xf32, #tpu.memory_space<vmem>>, vector<1x128xf32>
    %4 = vector.broadcast %3 : vector<1x128xf32> to vector<8x128xf32>
    %5 = arith.addf %2, %4 : vector<8x128xf32>
    %cst_5 = arith.constant 0.000000e+00 : f32
    %6 = vector.broadcast %cst_5 : f32 to vector<8x128xf32>
    %7 = arith.maximumf %5, %6 : vector<8x128xf32>
    %8 = arith.truncf %7 : vector<8x128xf32> to vector<8x128xbf16>
    %c0_6 = arith.constant 0 : index
    %c0_7 = arith.constant 0 : index
    %9 = vector.load %arg4[%c0_6, %c0_7] : memref<128x128xbf16, #tpu.memory_space<vmem>>, vector<128x128xbf16>
    %cst_8 = arith.constant dense<0.000000e+00> : vector<8x128xf32>
    %10 = tpu.matmul %8, %9, %cst_8 {dimension_numbers = #tpu.dot_dimension_numbers<[1], [0], [0], [1], [0, 0, 1, 1], [], []>} : vector<8x128xbf16>, vector<128x128xbf16>, vector<8x128xf32> -> vector<8x128xf32>
    %c0_9 = arith.constant 0 : index
    %c0_10 = arith.constant 0 : index
    %11 = vector.load %arg5[%c0_9, %c0_10] : memref<1x128xf32, #tpu.memory_space<vmem>>, vector<1x128xf32>
    %12 = vector.broadcast %11 : vector<1x128xf32> to vector<8x128xf32>
    %13 = arith.addf %10, %12 : vector<8x128xf32>
    %cst_11 = arith.constant 0.000000e+00 : f32
    %14 = vector.broadcast %cst_11 : f32 to vector<8x128xf32>
    %15 = arith.maximumf %13, %14 : vector<8x128xf32>
    %16 = arith.truncf %15 : vector<8x128xf32> to vector<8x128xbf16>
    %c0_12 = arith.constant 0 : index
    %c0_13 = arith.constant 0 : index
    %17 = vector.load %arg6[%c0_12, %c0_13] : memref<8x128xbf16, #tpu.memory_space<vmem>>, vector<8x128xbf16>
    %cst_14 = arith.constant dense<0.000000e+00> : vector<8x8xf32>
    %18 = tpu.matmul %17, %16, %cst_14 {dimension_numbers = #tpu.dot_dimension_numbers<[1], [1], [0], [0], [0, 0, 1, 0], [], []>} : vector<8x128xbf16>, vector<8x128xbf16>, vector<8x8xf32> -> vector<8x8xf32>
    %c0_15 = arith.constant 0 : index
    %c0_16 = arith.constant 0 : index
    %19 = vector.load %arg7[%c0_15, %c0_16] : memref<8x1xf32, #tpu.memory_space<vmem>>, vector<8x1xf32>
    %20 = vector.broadcast %19 : vector<8x1xf32> to vector<8x8xf32>
    %21 = arith.addf %18, %20 : vector<8x8xf32>
    %c0_17 = arith.constant 0 : index
    %c0_18 = arith.constant 0 : index
    %22 = vector.load %arg8[%c0_17, %c0_18] : memref<8x8xf32, #tpu.memory_space<vmem>>, vector<8x8xf32>
    tpu.vector_store %arg8[%c0_17, %c0_18], %21 {strides = array<i32>} : memref<8x8xf32, #tpu.memory_space<vmem>>, vector<8x8xf32>,
    return
  }
  func.func @transform_0(%arg0: i32) -> (i32, i32) {
    %c0_i32 = arith.constant 0 : i32
    %c0_i32_0 = arith.constant 0 : i32
    return %arg0, %c0_i32 : i32, i32
  }
  func.func @transform_1(%arg0: i32) -> (i32, i32) {
    %c0_i32 = arith.constant 0 : i32
    %c0_i32_0 = arith.constant 0 : i32
    %c0_i32_1 = arith.constant 0 : i32
    return %c0_i32, %c0_i32_0 : i32, i32
  }
  func.func @transform_2(%arg0: i32) -> (i32, i32) {
    %c0_i32 = arith.constant 0 : i32
    %c0_i32_0 = arith.constant 0 : i32
    %c0_i32_1 = arith.constant 0 : i32
    return %c0_i32, %c0_i32_0 : i32, i32
  }
  func.func @transform_3(%arg0: i32) -> (i32, i32) {
    %c0_i32 = arith.constant 0 : i32
    %c0_i32_0 = arith.constant 0 : i32
    %c0_i32_1 = arith.constant 0 : i32
    return %c0_i32, %c0_i32_0 : i32, i32
  }
  func.func @transform_4(%arg0: i32) -> (i32, i32) {
    %c0_i32 = arith.constant 0 : i32
    %c0_i32_0 = arith.constant 0 : i32
    %c0_i32_1 = arith.constant 0 : i32
    return %c0_i32, %c0_i32_0 : i32, i32
  }
  func.func @transform_5(%arg0: i32) -> (i32, i32) {
    %c0_i32 = arith.constant 0 : i32
    %c0_i32_0 = arith.constant 0 : i32
    %c0_i32_1 = arith.constant 0 : i32
    return %c0_i32, %c0_i32_0 : i32, i32
  }
  func.func @transform_6(%arg0: i32) -> (i32, i32) {
    %c0_i32 = arith.constant 0 : i32
    %c0_i32_0 = arith.constant 0 : i32
    %c0_i32_1 = arith.constant 0 : i32
    return %c0_i32, %c0_i32_0 : i32, i32
  }
  func.func @transform_7(%arg0: i32) -> (i32, i32) {
    %c0_i32 = arith.constant 0 : i32
    %c0_i32_0 = arith.constant 0 : i32
    return %c0_i32, %arg0 : i32, i32
  }
}

</mosaic_0001>

<bundles_post_ra>
// kernel: tpu_custom_call.1
= control target key start
LH: loop header
LB: loop body
LE: loop exit
PB: predicated region body
PF: predicated region fallthrough
CT: control target
= control target key end

     0   :  { %12 = vsyncpa [#allocation3], 0  ;;  %s491_s0 = inlined_call_operand.vmem [shape: bf16[8,8], index: 0, kind: input, shape index: {}]   ;;  %s492_s1 = inlined_call_operand.vmem [shape: bf16[8,128], index: 1, kind: input, shape index: {}]   ;;  %s493_s2 = inlined_call_operand.vmem [shape: f32[1,128], index: 2, kind: input, shape index: {}]   ;;  %s494_s3 = inlined_call_operand.hbm [shape: bf16[128,128], index: 3, kind: input, shape index: {}]   ;;  %s495_s4 = inlined_call_operand.vmem [shape: f32[1,128], index: 4, kind: input, shape index: {}]   ;;  %s496_s5 = inlined_call_operand.vmem [shape: bf16[8,128], index: 5, kind: input, shape index: {}]   ;;  %s497_s6 = inlined_call_operand.vmem [shape: f32[8,1], index: 6, kind: input, shape index: {}]   ;;  %s498_s7 = inlined_call_operand.hbm [shape: f32[8,8], index: 7, kind: output, shape index: {}]  }
   0x1   :  { %13 = vsyncpa [#allocation4], 0  ;;  %s397_s24 = smov [#allocation2]   ;;  %s349_s28 = scalar_lea.hbm %s494_s3, 1024 }
   0x2   :  { %s25_s25 = sshll.u32 %s397_s24, 4  ;;  %p350_p0 = scmp.ne.s32.totalorder %s494_s3, %s349_s28  ;;  %s26_s25 = int_to_ptr.vmem [resolvable:$true] %s25_s25 }
   0x3   :  { %p353_p1 = scmp.lt.u32.totalorder %s349_s28, %s494_s3 }
   0x5   :  { %p355_p2 = pnand %p353_p1, %p350_p0 }
   0x7   :  { %358 = shalt.err (!%p355_p2)
}
   0x8   :  { %s359_s10 = scalar_lea.vmem %s26_s25, 1024  ;;  %p364_p4 = scmp.lt.s32.totalorder %s26_s25, %s26_s25 }
   0x9   :  { %p360_p3 = scmp.ne.s32.totalorder %s26_s25, %s359_s10  ;;  %p365_p5 = scmp.lt.s32.totalorder %s359_s10, %s359_s10 }
   0xb   :  { %p366_p6 = por %p365_p5, %p364_p4 }
   0xd   :  { %p367_p7 = pnand %p366_p6, %p360_p3 }
   0xf   :  { %370 = shalt.err (!%p367_p7)
}
  0x10   :  { %s398_s11 = smov 64   ;;  %s399_s12 = smov 4  }
  0x11   :  { %31 = dma.hbm_to_vmem [thread:$0]  %s494_s3, 1024, %s26_s25, [#allocation3], %s398_s11, %s398_s11, %s399_s12  }
  0x12   :  { %393 = dma.done.wait [#allocation3], 1024  }
  0x13   :  { %394 = vsyncadd [#allocation3], 4294966272  ;;  %v400_v0 = vmov 0.0   ;;  %vm401_vm0 = vmmov 0   ;;  %vm55_vm1 = vcmask 1043456   ;;  %vm51_vm2 = vcmask 64512  }
  0x14   :  { %301 = vmatprep.subr.bf16.mxu0 %v400_v0  ;;  %303 = vmatprep.mubr.msk.bf16.mxu0 %vm401_vm0, %v400_v0  ;;  %v43_v1 = vld [vmem:[%s492_s1] sm:$0xf]  ;;  %v342_v5 = vld [vmem:[#allocation2 + $0x8] sm:$0xff]   ;;  %v343_v6 = vld [vmem:[#allocation2 + $0x10] sm:$0xff]   ;;  %v402_v21 = vmov 0  }
  0x15   :  { %307 = vmatprep.subr.bf16.mxu1 %v400_v0  ;;  %323 = vmatprep.mubr.msk.bf16.mxu1 %vm401_vm0, %v400_v0  ;;  %v57_v2 = vsel %vm55_vm1, %v43_v1, 0  ;;  %v341_v3 = vld [vmem:[#allocation2] sm:$0xff]   ;;  %v344_v7 = vld [vmem:[#allocation2 + $0x18] sm:$0xff]   ;;  %v346_v9 = vld [vmem:[#allocation2 + $0x28] sm:$0xff]  }
  0x16   :  { %302 = vmatpush3.bf16.msra.mxu0 %v57_v2  ;;  %v42_v4 = vld [vmem:[%s491_s0] sm:$0xf]  ;;  %308 = vmatpush3.bf16.msra.mxu1 %v341_v3  ;;  %v347_v10 = vld [vmem:[#allocation2 + $0x30] sm:$0xff]   ;;  %v348_v11 = vld [vmem:[#allocation2 + $0x38] sm:$0xff]  }
  0x17   :  { %327 = vmatprep.subr.bf16.mxu0 %v400_v0  ;;  %309 = vmatprep.subr.bf16.mxu1 %v400_v0  ;;  %v345_v8 = vld [vmem:[#allocation2 + $0x20] sm:$0xff]  }
  0x18   :  { %v277_v12 = vld [vmem:[%s493_s2] ss:$0 sm:$0xff]  ;;  %340 = vset.pattern.permute.xlu0 %v402_v21 }
  0x19   :  { %304 = vmatmul.mubr.msk.bf16.vlgmr.msra.gmra.mrb[0].mxu0 %vm51_vm2, %v42_v4  ;;  %v215_v20 = vld [vmem:[%s497_s6] sm:$0xff]  ;;  %s403_s6 = smov [#allocation5]  }
  0x1a   :  { %329 = vmatprep.mubr.msk.bf16.mxu0 %vm401_vm0, %v400_v0  ;;  %310 = vmatpush3.bf16.msra.mxu1 %v342_v5  ;;  %v279_v22 = vld [vmem:[%s495_s4] ss:$0 sm:$0xff]  ;;  %s268_s23 = sshll.u32 %s403_s6, 4  ;;  %s269_s23 = int_to_ptr.vmem [resolvable:$true] %s268_s23 }
  0x1b   :  { %311 = vmatprep.subr.bf16.mxu1 %v400_v0  ;;  %218 = vperm.xlu0 %340, %v215_v20   ;;  %v214_v30 = vld [vmem:[%s496_s5] sm:$0xf]  ;;  %s371_s4 = scalar_lea.vmem %s269_s23, 128  ;;  %p376_p9 = scmp.lt.s32.totalorder %s269_s23, %s269_s23 }
  0x1c   :  { %p372_p8 = scmp.ne.s32.totalorder %s269_s23, %s371_s4  ;;  %p377_p10 = scmp.lt.s32.totalorder %s371_s4, %s371_s4 }
  0x1e   :  { %312 = vmatpush3.bf16.msra.mxu1 %v343_v6  ;;  %p378_p11 = por %p377_p10, %p376_p9 }
  0x1f   :  { %313 = vmatprep.subr.bf16.mxu1 %v400_v0 }
  0x20   :  { %p379_p12 = pnand %p378_p11, %p372_p8 }
  0x22   :  { %314 = vmatpush3.bf16.msra.mxu1 %v344_v7 }
  0x23   :  { %315 = vmatprep.subr.bf16.mxu1 %v400_v0 }
  0x26   :  { %316 = vmatpush3.bf16.msra.mxu1 %v345_v8 }
  0x27   :  { %317 = vmatprep.subr.bf16.mxu1 %v400_v0 }
  0x2a   :  { %318 = vmatpush3.bf16.msra.mxu1 %v346_v9 }
  0x2b   :  { %319 = vmatprep.subr.bf16.mxu1 %v400_v0 }
  0x2e   :  { %320 = vmatpush3.bf16.msra.mxu1 %v347_v10 }
  0x2f   :  { %321 = vmatprep.subr.bf16.mxu1 %v400_v0 }
  0x32   :  { %322 = vmatpush3.bf16.msra.mxu1 %v348_v11 }
  0x9a   :  { %v219_v31 = vpop.permute.xlu0 %218 }
  0xec   :  { %v93_v13 = vpop.f32.mrb[0].mxu0 }
  0xed   :  { %v94_v14 = vadd.f32 %v277_v12, %v93_v13  ;;  %v305_v15 = vpop.f32.mrb[1].mxu0 }
  0xee   :  { %v96_v16 = vpop.f32.mrb[2].mxu0 }
  0xef   :  { %v99_v17 = vmax.f32 %v94_v14, 0.0  ;;  %v306_v18 = vpop.f32.mrb[3].mxu0 }
  0xf1   :  { %v100_v19 = vpack.c.bf16 %v99_v17, %v99_v17 }
  0xf3   :  { %324 = vmatmul.mubr.bf16.vlgmr.msra.gmra.mrb[0].mxu1 %v100_v19 }
 0x1c6   :  { %v206_v23 = vpop.f32.mrb[0].mxu1 }
 0x1c7   :  { %v207_v24 = vadd.f32 %v279_v22, %v206_v23  ;;  %v325_v25 = vpop.f32.mrb[1].mxu1 }
 0x1c8   :  { %v209_v26 = vpop.f32.mrb[2].mxu1 }
 0x1c9   :  { %v212_v27 = vmax.f32 %v207_v24, 0.0  ;;  %v326_v28 = vpop.f32.mrb[3].mxu1 }
 0x1cb   :  { %v213_v29 = vpack.c.bf16 %v212_v27, %v212_v27 }
 0x1cd   :  { %328 = vmatpush3.bf16.xpose.msra.mxu0 %v213_v29 }
 0x1d4   :  { %330 = vmatmul.mubr.bf16.vlgmr.msra.gmra.mrb[4].mxu0 %v214_v30 }
 0x2a7   :  { %v255_v32 = vpop.f32.mrb[4].mxu0 }
 0x2a8   :  { %v256_v33 = vadd.f32 %v255_v32, %v219_v31  ;;  %v331_v34 = vpop.f32.mrb[5].mxu0 }
 0x2a9   :  { %v258_v35 = vpop.f32.mrb[6].mxu0 }
 0x2aa   :  { %261 = vst.msk [vmem:[#allocation5] sm:$0xff] %vm51_vm2, %v256_v33  ;;  %v332_v36 = vpop.f32.mrb[7].mxu0 }
 0x2ab   :  { %382 = shalt.err (!%p379_p12)
}
 0x2ac   :  { %s383_s25 = scalar_lea.hbm %s498_s7, 128 }
 0x2ad   :  { %p384_p13 = scmp.ne.s32.totalorder %s498_s7, %s383_s25  ;;  %p387_p0 = scmp.lt.u32.totalorder %s383_s25, %s498_s7 }
 0x2af   :  { %p389_p1 = pnand %p387_p0, %p384_p13 }
 0x2b1   :  { %392 = shalt.err (!%p389_p1)
}
 0x2b2   :  { %271 = dma.vmem_to_hbm [thread:$0]  %s269_s23, 128, %s498_s7, [#allocation4]  }
 0x2b3   :  { %395 = dma.done.wait [#allocation4], 128  }
 0x2b4   :  { %396 = vsyncadd [#allocation4], 4294967168 }
 0x2b5   :  { %275 = vsyncpa [#allocation3], 1 }
 0x2b6   :  { %276 = vsyncpa [#allocation4], 1 }

</bundles_post_ra>
